<compile_context>
chip_gen: v7x
topology: tpu7x:2x2x1
jax: 0.10.0
libtpu: 0.0.40
codegen_flags: <defaults>
</compile_context>

<pallas_src>
import jax
import jax.numpy as jnp
from jax.experimental import pallas as pl
from jax.experimental.pallas import tpu as pltpu


# ---------------------------------------------------------------------------
# Shared per-timestep math (used by both the single-step and rollout kernels).
# ---------------------------------------------------------------------------
def _lstm_stack_step(x, h0s, c0s, w_big, wih_ref, b_big, L, S):
    """One pass over the L stacked LSTM cells.

    x:     (B, S) f32 external input of this timestep (B == 1).
    h0s:   list of L (B, S) f32 — LSTMCell hidden inputs (module's prev_c).
    c0s:   list of L (B, S) f32 — LSTMCell cell inputs   (module's prev_h).
    w_big: ((L+1)*S, L*4S) bf16/f32 block-fused weights.
    wih_ref: (L, S, 4S) ref — per-layer fused input->gate weights
             (layer 0's slab is unused: it is folded into w_big).
    b_big: (1, L*4S) f32 fused, gate-scaled biases.
    Returns (h1s, c1s): lists of L (B, S) f32.
    """
    w_dtype = w_big.dtype

    # One MXU push for every input-independent term:
    #   columns [0, 4S)        -> layer 0's FULL gate pre-activation
    #   columns [l*4S,(l+1)*4S) -> recurrent-only term h0[l] @ W_hh_f[l], l>=1
    xc = jnp.concatenate([x] + list(h0s), axis=-1)               # (B, (L+1)S)
    pre = jnp.dot(xc.astype(w_dtype), w_big,
                  preferred_element_type=jnp.float32) + b_big    # (B, L*4S)

    h1s, c1s = [], []
    for l in range(L):
        if l == 0:
            gates = pre[:, 0:4 * S]
        else:
            gates = (jnp.dot(x.astype(w_dtype), wih_ref[l],
                             preferred_element_type=jnp.float32)
                     + pre[:, l * 4 * S:(l + 1) * 4 * S])

        # Single EUP pass per layer: i/f/o columns were pre-scaled by 0.5 so
        # sigmoid(z) == 0.5 * (tanh(z/2) + 1); the g column keeps scale 1.
        t = jnp.tanh(gates)                                      # (B, 4S)
        i_g = 0.5 * (t[:, 0 * S:1 * S] + 1.0)
        f_g = 0.5 * (t[:, 1 * S:2 * S] + 1.0)
        g_g = t[:, 2 * S:3 * S]
        o_g = 0.5 * (t[:, 3 * S:4 * S] + 1.0)

        c1 = f_g * c0s[l] + i_g * g_g
        h1 = o_g * jnp.tanh(c1)
        h1s.append(h1)
        c1s.append(c1)
        # module: inputs = curr_h[-1].view(1, -1); with B == 1 this is c1.
        x = c1
    return h1s, c1s


# ---------------------------------------------------------------------------
# Single timestep kernel (gridless, everything VMEM-resident).
# ---------------------------------------------------------------------------
def _stacked_lstm_kernel(x_ref, pc_ref, ph_ref, wbig_ref, wih_ref, b_ref,
                         nc_ref, nh_ref):
    L, B, S = pc_ref.shape
    h0s = [pc_ref[l] for l in range(L)]          # prev_c used as LSTMCell h0
    c0s = [ph_ref[l] for l in range(L)]          # prev_h used as LSTMCell c0
    h1s, c1s = _lstm_stack_step(x_ref[...], h0s, c0s,
                                wbig_ref[...], wih_ref, b_ref[...], L, S)
    for l in range(L):
        nc_ref[l] = h1s[l]                       # module: curr_c = LSTMCell h1
        nh_ref[l] = c1s[l]                       # module: curr_h = LSTMCell c1


# ---------------------------------------------------------------------------
# Multi-timestep rollout kernel: grid=(T,), weights + h/c state VMEM-resident.
# ---------------------------------------------------------------------------
def _stacked_lstm_rollout_kernel(xseq_ref, pc_ref, ph_ref, wbig_ref, wih_ref,
                                 b_ref, hseq_ref, nc_ref, nh_ref):
    L, B, S = pc_ref.shape
    t = pl.program_id(0)

    # Step 0: seed the resident state.  nc/nh output blocks have a constant
    # block index over T, so they stay in VMEM across all grid steps.
    @pl.when(t == 0)
    def _():
        nc_ref[...] = pc_ref[...]
        nh_ref[...] = ph_ref[...]

    x = xseq_ref[0]                              # (B, S) external input, step t
    h0s = [nc_ref[l] for l in range(L)]          # state in the "c" role (h1's)
    c0s = [nh_ref[l] for l in range(L)]          # state in the "h" role (c1's)
    h1s, c1s = _lstm_stack_step(x, h0s, c0s, wbig_ref[...], wih_ref,
                                b_ref[...], L, S)
    for l in range(L):
        nc_ref[l] = h1s[l]
        nh_ref[l] = c1s[l]
    # Per-step module output: curr_h[-1] (= c1 of the last layer).
    hseq_ref[0] = c1s[L - 1]


# ---------------------------------------------------------------------------
# Weight preparation — call ONCE per weight update, cache across timesteps.
# ---------------------------------------------------------------------------
def prepare_weights(w_ih, w_hh, b_ih, b_hh, dtype=jnp.bfloat16):
    """Fuse per-gate weights into lane-dense, block-fused, gate-scaled tensors.

    w_ih/w_hh: (L, 4, S, S), each gate matrix laid out (out, in); gate order
    i, f, g, o (PyTorch nn.LSTMCell).  b_ih/b_hh: (L, 4, S).

    Returns (w_big, wih_f, b_big):
      w_big: ((L+1)*S, L*4S) in `dtype` — concat([x, h0[0..L-1]]) @ w_big gives
             layer-0's full gate pre-activation and h0[l] @ W_hh_f[l] for l>=1.
      wih_f: (L, S, 4S) in `dtype` — x @ wih_f[l] == concat_g(x @ W_g^T)
             (layer 0's slab is redundant with w_big; kept for simple indexing).
      b_big: (1, L*4S) f32 fused biases.
    All i/f/o columns (and biases) carry an extra 0.5 so the kernel can use the
    tanh-only sigmoid identity.
    """
    L, G, S, _ = w_ih.shape
    assert G == 4
    gate_scale = jnp.concatenate([
        jnp.full((S,), 0.5, jnp.float32),    # i
        jnp.full((S,), 0.5, jnp.float32),    # f
        jnp.ones((S,), jnp.float32),         # g  (tanh, keep scale 1)
        jnp.full((S,), 0.5, jnp.float32),    # o
    ])                                        # (4S,)

    wih_f = jnp.transpose(w_ih, (0, 3, 1, 2)).reshape(L, S, 4 * S) * gate_scale
    whh_f = jnp.transpose(w_hh, (0, 3, 1, 2)).reshape(L, S, 4 * S) * gate_scale
    b_f = (b_ih + b_hh).reshape(L, 4 * S) * gate_scale            # (L, 4S)

    w_big = jnp.zeros(((L + 1) * S, L * 4 * S), jnp.float32)
    w_big = w_big.at[0:S, 0:4 * S].set(wih_f[0])                  # layer-0 x part
    for l in range(L):
        w_big = w_big.at[(l + 1) * S:(l + 2) * S,
                         l * 4 * S:(l + 1) * 4 * S].set(whh_f[l])  # recurrent
    b_big = b_f.reshape(1, L * 4 * S)

    return w_big.astype(dtype), wih_f.astype(dtype), b_big.astype(jnp.float32)


# ---------------------------------------------------------------------------
# Wrappers
# ---------------------------------------------------------------------------
@jax.jit
def stacked_lstm_cell_fused(x, prev_c, prev_h, w_big, wih_f, b_big):
    """x: (1, S); prev_c/prev_h: (L, 1, S) f32; fused weights from
    prepare_weights.  Returns (next_c, next_h), each (L, 1, S) f32."""
    L, B, S = prev_c.shape
    assert B == 1, "module implies batch == 1 (inputs = curr_h[-1].view(1,-1))"
    G = 4 * S
    return pl.pallas_call(
        _stacked_lstm_kernel,
        out_shape=(jax.ShapeDtypeStruct((L, B, S), jnp.float32),
                   jax.ShapeDtypeStruct((L, B, S), jnp.float32)),
        # Gridless: one invocation, whole arrays resident in VMEM (~0.2 MB).
        in_specs=[
            pl.BlockSpec((B, S), lambda: (0, 0)),
            pl.BlockSpec((L, B, S), lambda: (0, 0, 0)),
            pl.BlockSpec((L, B, S), lambda: (0, 0, 0)),
            pl.BlockSpec(((L + 1) * S, L * G), lambda: (0, 0)),
            pl.BlockSpec((L, S, G), lambda: (0, 0, 0)),
            pl.BlockSpec((1, L * G), lambda: (0, 0)),
        ],
        out_specs=(
            pl.BlockSpec((L, B, S), lambda: (0, 0, 0)),
            pl.BlockSpec((L, B, S), lambda: (0, 0, 0)),
        ),
        # Donate prev_c -> next_c and prev_h -> next_h HBM buffers.
        input_output_aliases={1: 0, 2: 1},
    )(x, prev_c, prev_h, w_big, wih_f, b_big)


@jax.jit
def stacked_lstm_rollout(x_seq, prev_c, prev_h, w_big, wih_f, b_big):
    """Fused T-step rollout: x_seq (T, 1, S) of per-step external inputs.
    Weights are DMA'd once and stay VMEM-resident; h/c state is carried in the
    revisited next_c/next_h output blocks.  Returns (h_seq, next_c, next_h):
    h_seq[t] = curr_h[-1] of step t (shape (T, 1, S))."""
    T, B, S = x_seq.shape
    L = prev_c.shape[0]
    assert B == 1, "module implies batch == 1 (inputs = curr_h[-1].view(1,-1))"
    G = 4 * S
    return pl.pallas_call(
        _stacked_lstm_rollout_kernel,
        out_shape=(jax.ShapeDtypeStruct((T, B, S), jnp.float32),
                   jax.ShapeDtypeStruct((L, B, S), jnp.float32),
                   jax.ShapeDtypeStruct((L, B, S), jnp.float32)),
        grid=(T,),
        in_specs=[
            pl.BlockSpec((1, B, S), lambda t: (t, 0, 0)),          # x_seq/step
            pl.BlockSpec((L, B, S), lambda t: (0, 0, 0)),          # prev_c once
            pl.BlockSpec((L, B, S), lambda t: (0, 0, 0)),          # prev_h once
            pl.BlockSpec(((L + 1) * S, L * G), lambda t: (0, 0)),  # w_big resident
            pl.BlockSpec((L, S, G), lambda t: (0, 0, 0)),          # wih_f resident
            pl.BlockSpec((1, L * G), lambda t: (0, 0)),            # b_big resident
        ],
        out_specs=(
            pl.BlockSpec((1, B, S), lambda t: (t, 0, 0)),          # h_seq
            pl.BlockSpec((L, B, S), lambda t: (0, 0, 0)),          # next_c (state)
            pl.BlockSpec((L, B, S), lambda t: (0, 0, 0)),          # next_h (state)
        ),
        compiler_params=pltpu.CompilerParams(
            dimension_semantics=("arbitrary",)),
    )(x_seq, prev_c, prev_h, w_big, wih_f, b_big)


def stacked_lstm_cell(x, prev_c, prev_h, w_ih, w_hh, b_ih, b_hh,
                      dtype=jnp.bfloat16):
    """Drop-in convenience wrapper (re-fuses weights every call; prefer
    prepare_weights() + stacked_lstm_cell_fused() with cached weights)."""
    w_big, wih_f, b_big = prepare_weights(w_ih, w_hh, b_ih, b_hh, dtype=dtype)
    return stacked_lstm_cell_fused(x, prev_c, prev_h, w_big, wih_f, b_big)


# ---------------------------------------------------------------------------
# Pure-JAX references mirroring the PyTorch module's forward.
# ---------------------------------------------------------------------------
def _reference(x, prev_c, prev_h, w_ih, w_hh, b_ih, b_hh):
    L, B, S = prev_c.shape
    inputs = x
    next_c, next_h = [], []
    for l in range(L):
        h0, c0 = prev_c[l], prev_h[l]
        wih = w_ih[l].reshape(4 * S, S)
        whh = w_hh[l].reshape(4 * S, S)
        bias = (b_ih[l] + b_hh[l]).reshape(4 * S)
        gates = inputs @ wih.T + h0 @ whh.T + bias
        i_g = jax.nn.sigmoid(gates[:, 0 * S:1 * S])
        f_g = jax.nn.sigmoid(gates[:, 1 * S:2 * S])
        g_g = jnp.tanh(gates[:, 2 * S:3 * S])
        o_g = jax.nn.sigmoid(gates[:, 3 * S:4 * S])
        c1 = f_g * c0 + i_g * g_g
        h1 = o_g * jnp.tanh(c1)
        next_c.append(h1)
        next_h.append(c1)
        inputs = c1[-1].reshape(1, -1)
    return jnp.stack(next_c), jnp.stack(next_h)


def _reference_rollout(x_seq, prev_c, prev_h, w_ih, w_hh, b_ih, b_hh):
    T = x_seq.shape[0]
    c, h = prev_c, prev_h
    outs = []
    for t in range(T):
        c, h = _reference(x_seq[t], c, h, w_ih, w_hh, b_ih, b_hh)
        outs.append(h[-1])
    return jnp.stack(outs), c, h


# ---------------------------------------------------------------------------
if __name__ == "__main__":
    LAYERS, SIZE, BATCH, STEPS = 3, 32, 1, 8   # nn.LSTMCell(size, size)

    key = jax.random.PRNGKey(0)
    ks = jax.random.split(key, 8)
    scale = 1.0 / jnp.sqrt(SIZE)
    x = jax.random.normal(ks[0], (BATCH, SIZE), jnp.float32)
    prev_c = jax.random.normal(ks[1], (LAYERS, BATCH, SIZE), jnp.float32)
    prev_h = jax.random.normal(ks[2], (LAYERS, BATCH, SIZE), jnp.float32)
    w_ih = jax.random.uniform(ks[3], (LAYERS, 4, SIZE, SIZE), jnp.float32,
                              -scale, scale)
    w_hh = jax.random.uniform(ks[4], (LAYERS, 4, SIZE, SIZE), jnp.float32,
                              -scale, scale)
    b_ih = jax.random.uniform(ks[5], (LAYERS, 4, SIZE), jnp.float32,
                              -scale, scale)
    b_hh = jax.random.uniform(ks[6], (LAYERS, 4, SIZE), jnp.float32,
                              -scale, scale)
    x_seq = jax.random.normal(ks[7], (STEPS, BATCH, SIZE), jnp.float32)

    # Exact f32 references.
    ref_c, ref_h = _reference(x, prev_c, prev_h, w_ih, w_hh, b_ih, b_hh)
    ref_hseq, ref_rc, ref_rh = _reference_rollout(
        x_seq, prev_c, prev_h, w_ih, w_hh, b_ih, b_hh)

    # --- Fast path: bf16 fused weights (prepared once, cached across steps) --
    wb16 = jax.block_until_ready(
        prepare_weights(w_ih, w_hh, b_ih, b_hh, dtype=jnp.bfloat16))

    nc16, nh16 = jax.block_until_ready(
        stacked_lstm_cell_fused(x, prev_c, prev_h, *wb16))
    assert jnp.allclose(nc16, ref_c, atol=1e-1, rtol=5e-2)
    assert jnp.allclose(nh16, ref_h, atol=1e-1, rtol=5e-2)

    hs16, rc16, rh16 = jax.block_until_ready(
        stacked_lstm_rollout(x_seq, prev_c, prev_h, *wb16))
    assert bool(jnp.all(jnp.isfinite(hs16)))
    assert jnp.allclose(hs16, ref_hseq, atol=3e-1, rtol=1.5e-1)

    # --- Exact-precision validation path: f32 fused weights -----------------
    wb32 = prepare_weights(w_ih, w_hh, b_ih, b_hh, dtype=jnp.float32)

    nc32, nh32 = jax.block_until_ready(
        stacked_lstm_cell_fused(x, prev_c, prev_h, *wb32))
    assert jnp.allclose(nc32, ref_c, atol=1e-4, rtol=1e-4)
    assert jnp.allclose(nh32, ref_h, atol=1e-4, rtol=1e-4)

    hs32, rc32, rh32 = jax.block_until_ready(
        stacked_lstm_rollout(x_seq, prev_c, prev_h, *wb32))
    assert jnp.allclose(hs32, ref_hseq, atol=1e-3, rtol=1e-3)
    assert jnp.allclose(rc32, ref_rc, atol=1e-3, rtol=1e-3)
    assert jnp.allclose(rh32, ref_rh, atol=1e-3, rtol=1e-3)

    print("KERNEL_OK")
</pallas_src>

<mosaic_0001>
module attributes {stable_mosaic.version = 11 : i64} {
  func.func @_stacked_lstm_kernel(%arg0: memref<1x32xf32, #tpu.memory_space<vmem>>, %arg1: memref<3x1x32xf32, #tpu.memory_space<vmem>>, %arg2: memref<3x1x32xf32, #tpu.memory_space<vmem>>, %arg3: memref<128x384xbf16, #tpu.memory_space<vmem>>, %arg4: memref<3x32x128xbf16, #tpu.memory_space<vmem>>, %arg5: memref<1x384xf32, #tpu.memory_space<vmem>>, %arg6: memref<3x1x32xf32, #tpu.memory_space<vmem>>, %arg7: memref<3x1x32xf32, #tpu.memory_space<vmem>>) attributes {dimension_semantics = [], scalar_prefetch = 0 : i64, scratch_operands = 0 : i64, tpu.core_type = #tpu.core_type<tc>} {
    %c0 = arith.constant 0 : index
    %c0_0 = arith.constant 0 : index
    %c0_1 = arith.constant 0 : index
    %0 = vector.load %arg1[%c0, %c0_0, %c0_1] : memref<3x1x32xf32, #tpu.memory_space<vmem>>, vector<1x1x32xf32>
    %1 = vector.shape_cast %0 : vector<1x1x32xf32> to vector<1x32xf32>
    %c1 = arith.constant 1 : index
    %c0_2 = arith.constant 0 : index
    %c0_3 = arith.constant 0 : index
    %2 = vector.load %arg1[%c1, %c0_2, %c0_3] : memref<3x1x32xf32, #tpu.memory_space<vmem>>, vector<1x1x32xf32>
    %3 = vector.shape_cast %2 : vector<1x1x32xf32> to vector<1x32xf32>
    %c2 = arith.constant 2 : index
    %c0_4 = arith.constant 0 : index
    %c0_5 = arith.constant 0 : index
    %4 = vector.load %arg1[%c2, %c0_4, %c0_5] : memref<3x1x32xf32, #tpu.memory_space<vmem>>, vector<1x1x32xf32>
    %5 = vector.shape_cast %4 : vector<1x1x32xf32> to vector<1x32xf32>
    %c0_6 = arith.constant 0 : index
    %c0_7 = arith.constant 0 : index
    %c0_8 = arith.constant 0 : index
    %6 = vector.load %arg2[%c0_6, %c0_7, %c0_8] : memref<3x1x32xf32, #tpu.memory_space<vmem>>, vector<1x1x32xf32>
    %7 = vector.shape_cast %6 : vector<1x1x32xf32> to vector<1x32xf32>
    %c1_9 = arith.constant 1 : index
    %c0_10 = arith.constant 0 : index
    %c0_11 = arith.constant 0 : index
    %8 = vector.load %arg2[%c1_9, %c0_10, %c0_11] : memref<3x1x32xf32, #tpu.memory_space<vmem>>, vector<1x1x32xf32>
    %9 = vector.shape_cast %8 : vector<1x1x32xf32> to vector<1x32xf32>
    %c2_12 = arith.constant 2 : index
    %c0_13 = arith.constant 0 : index
    %c0_14 = arith.constant 0 : index
    %10 = vector.load %arg2[%c2_12, %c0_13, %c0_14] : memref<3x1x32xf32, #tpu.memory_space<vmem>>, vector<1x1x32xf32>
    %11 = vector.shape_cast %10 : vector<1x1x32xf32> to vector<1x32xf32>
    %c0_15 = arith.constant 0 : index
    %c0_16 = arith.constant 0 : index
    %12 = vector.load %arg0[%c0_15, %c0_16] : memref<1x32xf32, #tpu.memory_space<vmem>>, vector<1x32xf32>
    %c0_17 = arith.constant 0 : index
    %c0_18 = arith.constant 0 : index
    %13 = vector.load %arg3[%c0_17, %c0_18] : memref<128x384xbf16, #tpu.memory_space<vmem>>, vector<128x384xbf16>
    %c0_19 = arith.constant 0 : index
    %c0_20 = arith.constant 0 : index
    %14 = vector.load %arg5[%c0_19, %c0_20] : memref<1x384xf32, #tpu.memory_space<vmem>>, vector<1x384xf32>
    %15 = tpu.concatenate %12, %1, %3, %5 in 1 : vector<1x32xf32>, vector<1x32xf32>, vector<1x32xf32>, vector<1x32xf32> -> vector<1x128xf32>
    %16 = arith.truncf %15 : vector<1x128xf32> to vector<1x128xbf16>
    %cst = arith.constant dense<0.000000e+00> : vector<1x384xf32>
    %17 = tpu.matmul %16, %13, %cst {dimension_numbers = #tpu.dot_dimension_numbers<[1], [0], [0], [1], [0, 0, 1, 1], [], []>} : vector<1x128xbf16>, vector<128x384xbf16>, vector<1x384xf32> -> vector<1x384xf32>
    %18 = arith.addf %17, %14 : vector<1x384xf32>
    %19 = vector.extract_strided_slice %18 {offsets = [0, 0], sizes = [1, 128], strides = [1, 1]} : vector<1x384xf32> to vector<1x128xf32>
    %20 = math.tanh %19 : vector<1x128xf32>
    %21 = vector.extract_strided_slice %20 {offsets = [0, 0], sizes = [1, 32], strides = [1, 1]} : vector<1x128xf32> to vector<1x32xf32>
    %cst_21 = arith.constant 1.000000e+00 : f32
    %22 = vector.broadcast %cst_21 : f32 to vector<1x32xf32>
    %23 = arith.addf %21, %22 : vector<1x32xf32>
    %cst_22 = arith.constant 5.000000e-01 : f32
    %24 = vector.broadcast %cst_22 : f32 to vector<1x32xf32>
    %25 = arith.mulf %24, %23 : vector<1x32xf32>
    %26 = vector.extract_strided_slice %20 {offsets = [0, 32], sizes = [1, 32], strides = [1, 1]} : vector<1x128xf32> to vector<1x32xf32>
    %cst_23 = arith.constant 1.000000e+00 : f32
    %27 = vector.broadcast %cst_23 : f32 to vector<1x32xf32>
    %28 = arith.addf %26, %27 : vector<1x32xf32>
    %cst_24 = arith.constant 5.000000e-01 : f32
    %29 = vector.broadcast %cst_24 : f32 to vector<1x32xf32>
    %30 = arith.mulf %29, %28 : vector<1x32xf32>
    %31 = vector.extract_strided_slice %20 {offsets = [0, 64], sizes = [1, 32], strides = [1, 1]} : vector<1x128xf32> to vector<1x32xf32>
    %32 = vector.extract_strided_slice %20 {offsets = [0, 96], sizes = [1, 32], strides = [1, 1]} : vector<1x128xf32> to vector<1x32xf32>
    %cst_25 = arith.constant 1.000000e+00 : f32
    %33 = vector.broadcast %cst_25 : f32 to vector<1x32xf32>
    %34 = arith.addf %32, %33 : vector<1x32xf32>
    %cst_26 = arith.constant 5.000000e-01 : f32
    %35 = vector.broadcast %cst_26 : f32 to vector<1x32xf32>
    %36 = arith.mulf %35, %34 : vector<1x32xf32>
    %37 = arith.mulf %30, %7 : vector<1x32xf32>
    %38 = arith.mulf %25, %31 : vector<1x32xf32>
    %39 = arith.addf %37, %38 : vector<1x32xf32>
    %40 = math.tanh %39 : vector<1x32xf32>
    %41 = arith.mulf %36, %40 : vector<1x32xf32>
    %42 = arith.truncf %39 : vector<1x32xf32> to vector<1x32xbf16>
    %c1_27 = arith.constant 1 : index
    %c0_28 = arith.constant 0 : index
    %c0_29 = arith.constant 0 : index
    %43 = vector.load %arg4[%c1_27, %c0_28, %c0_29] : memref<3x32x128xbf16, #tpu.memory_space<vmem>>, vector<1x32x128xbf16>
    %44 = vector.shape_cast %43 : vector<1x32x128xbf16> to vector<32x128xbf16>
    %cst_30 = arith.constant dense<0.000000e+00> : vector<1x128xf32>
    %45 = tpu.matmul %42, %44, %cst_30 {dimension_numbers = #tpu.dot_dimension_numbers<[1], [0], [0], [1], [0, 0, 1, 1], [], []>} : vector<1x32xbf16>, vector<32x128xbf16>, vector<1x128xf32> -> vector<1x128xf32>
    %46 = vector.extract_strided_slice %18 {offsets = [0, 128], sizes = [1, 128], strides = [1, 1]} : vector<1x384xf32> to vector<1x128xf32>
    %47 = arith.addf %45, %46 : vector<1x128xf32>
    %48 = math.tanh %47 : vector<1x128xf32>
    %49 = vector.extract_strided_slice %48 {offsets = [0, 0], sizes = [1, 32], strides = [1, 1]} : vector<1x128xf32> to vector<1x32xf32>
    %cst_31 = arith.constant 1.000000e+00 : f32
    %50 = vector.broadcast %cst_31 : f32 to vector<1x32xf32>
    %51 = arith.addf %49, %50 : vector<1x32xf32>
    %cst_32 = arith.constant 5.000000e-01 : f32
    %52 = vector.broadcast %cst_32 : f32 to vector<1x32xf32>
    %53 = arith.mulf %52, %51 : vector<1x32xf32>
    %54 = vector.extract_strided_slice %48 {offsets = [0, 32], sizes = [1, 32], strides = [1, 1]} : vector<1x128xf32> to vector<1x32xf32>
    %cst_33 = arith.constant 1.000000e+00 : f32
    %55 = vector.broadcast %cst_33 : f32 to vector<1x32xf32>
    %56 = arith.addf %54, %55 : vector<1x32xf32>
    %cst_34 = arith.constant 5.000000e-01 : f32
    %57 = vector.broadcast %cst_34 : f32 to vector<1x32xf32>
    %58 = arith.mulf %57, %56 : vector<1x32xf32>
    %59 = vector.extract_strided_slice %48 {offsets = [0, 64], sizes = [1, 32], strides = [1, 1]} : vector<1x128xf32> to vector<1x32xf32>
    %60 = vector.extract_strided_slice %48 {offsets = [0, 96], sizes = [1, 32], strides = [1, 1]} : vector<1x128xf32> to vector<1x32xf32>
    %cst_35 = arith.constant 1.000000e+00 : f32
    %61 = vector.broadcast %cst_35 : f32 to vector<1x32xf32>
    %62 = arith.addf %60, %61 : vector<1x32xf32>
    %cst_36 = arith.constant 5.000000e-01 : f32
    %63 = vector.broadcast %cst_36 : f32 to vector<1x32xf32>
    %64 = arith.mulf %63, %62 : vector<1x32xf32>
    %65 = arith.mulf %58, %9 : vector<1x32xf32>
    %66 = arith.mulf %53, %59 : vector<1x32xf32>
    %67 = arith.addf %65, %66 : vector<1x32xf32>
    %68 = math.tanh %67 : vector<1x32xf32>
    %69 = arith.mulf %64, %68 : vector<1x32xf32>
    %70 = arith.truncf %67 : vector<1x32xf32> to vector<1x32xbf16>
    %c2_37 = arith.constant 2 : index
    %c0_38 = arith.constant 0 : index
    %c0_39 = arith.constant 0 : index
    %71 = vector.load %arg4[%c2_37, %c0_38, %c0_39] : memref<3x32x128xbf16, #tpu.memory_space<vmem>>, vector<1x32x128xbf16>
    %72 = vector.shape_cast %71 : vector<1x32x128xbf16> to vector<32x128xbf16>
    %cst_40 = arith.constant dense<0.000000e+00> : vector<1x128xf32>
    %73 = tpu.matmul %70, %72, %cst_40 {dimension_numbers = #tpu.dot_dimension_numbers<[1], [0], [0], [1], [0, 0, 1, 1], [], []>} : vector<1x32xbf16>, vector<32x128xbf16>, vector<1x128xf32> -> vector<1x128xf32>
    %74 = vector.extract_strided_slice %18 {offsets = [0, 256], sizes = [1, 128], strides = [1, 1]} : vector<1x384xf32> to vector<1x128xf32>
    %75 = arith.addf %73, %74 : vector<1x128xf32>
    %76 = math.tanh %75 : vector<1x128xf32>
    %77 = vector.extract_strided_slice %76 {offsets = [0, 0], sizes = [1, 32], strides = [1, 1]} : vector<1x128xf32> to vector<1x32xf32>
    %cst_41 = arith.constant 1.000000e+00 : f32
    %78 = vector.broadcast %cst_41 : f32 to vector<1x32xf32>
    %79 = arith.addf %77, %78 : vector<1x32xf32>
    %cst_42 = arith.constant 5.000000e-01 : f32
    %80 = vector.broadcast %cst_42 : f32 to vector<1x32xf32>
    %81 = arith.mulf %80, %79 : vector<1x32xf32>
    %82 = vector.extract_strided_slice %76 {offsets = [0, 32], sizes = [1, 32], strides = [1, 1]} : vector<1x128xf32> to vector<1x32xf32>
    %cst_43 = arith.constant 1.000000e+00 : f32
    %83 = vector.broadcast %cst_43 : f32 to vector<1x32xf32>
    %84 = arith.addf %82, %83 : vector<1x32xf32>
    %cst_44 = arith.constant 5.000000e-01 : f32
    %85 = vector.broadcast %cst_44 : f32 to vector<1x32xf32>
    %86 = arith.mulf %85, %84 : vector<1x32xf32>
    %87 = vector.extract_strided_slice %76 {offsets = [0, 64], sizes = [1, 32], strides = [1, 1]} : vector<1x128xf32> to vector<1x32xf32>
    %88 = vector.extract_strided_slice %76 {offsets = [0, 96], sizes = [1, 32], strides = [1, 1]} : vector<1x128xf32> to vector<1x32xf32>
    %cst_45 = arith.constant 1.000000e+00 : f32
    %89 = vector.broadcast %cst_45 : f32 to vector<1x32xf32>
    %90 = arith.addf %88, %89 : vector<1x32xf32>
    %cst_46 = arith.constant 5.000000e-01 : f32
    %91 = vector.broadcast %cst_46 : f32 to vector<1x32xf32>
    %92 = arith.mulf %91, %90 : vector<1x32xf32>
    %93 = arith.mulf %86, %11 : vector<1x32xf32>
    %94 = arith.mulf %81, %87 : vector<1x32xf32>
    %95 = arith.addf %93, %94 : vector<1x32xf32>
    %96 = math.tanh %95 : vector<1x32xf32>
    %97 = arith.mulf %92, %96 : vector<1x32xf32>
    %c0_47 = arith.constant 0 : index
    %c0_48 = arith.constant 0 : index
    %c0_49 = arith.constant 0 : index
    %98 = vector.load %arg6[%c0_47, %c0_48, %c0_49] : memref<3x1x32xf32, #tpu.memory_space<vmem>>, vector<1x1x32xf32>
    %99 = vector.shape_cast %98 : vector<1x1x32xf32> to vector<1x32xf32>
    %100 = vector.shape_cast %41 : vector<1x32xf32> to vector<1x1x32xf32>
    tpu.vector_store %arg6[%c0_47, %c0_48, %c0_49], %100 {strides = array<i32>} : memref<3x1x32xf32, #tpu.memory_space<vmem>>, vector<1x1x32xf32>,
    %c0_50 = arith.constant 0 : index
    %c0_51 = arith.constant 0 : index
    %c0_52 = arith.constant 0 : index
    %101 = vector.load %arg7[%c0_50, %c0_51, %c0_52] : memref<3x1x32xf32, #tpu.memory_space<vmem>>, vector<1x1x32xf32>
    %102 = vector.shape_cast %101 : vector<1x1x32xf32> to vector<1x32xf32>
    %103 = vector.shape_cast %39 : vector<1x32xf32> to vector<1x1x32xf32>
    tpu.vector_store %arg7[%c0_50, %c0_51, %c0_52], %103 {strides = array<i32>} : memref<3x1x32xf32, #tpu.memory_space<vmem>>, vector<1x1x32xf32>,
    %c1_53 = arith.constant 1 : index
    %c0_54 = arith.constant 0 : index
    %c0_55 = arith.constant 0 : index
    %104 = vector.load %arg6[%c1_53, %c0_54, %c0_55] : memref<3x1x32xf32, #tpu.memory_space<vmem>>, vector<1x1x32xf32>
    %105 = vector.shape_cast %104 : vector<1x1x32xf32> to vector<1x32xf32>
    %106 = vector.shape_cast %69 : vector<1x32xf32> to vector<1x1x32xf32>
    tpu.vector_store %arg6[%c1_53, %c0_54, %c0_55], %106 {strides = array<i32>} : memref<3x1x32xf32, #tpu.memory_space<vmem>>, vector<1x1x32xf32>,
    %c1_56 = arith.constant 1 : index
    %c0_57 = arith.constant 0 : index
    %c0_58 = arith.constant 0 : index
    %107 = vector.load %arg7[%c1_56, %c0_57, %c0_58] : memref<3x1x32xf32, #tpu.memory_space<vmem>>, vector<1x1x32xf32>
    %108 = vector.shape_cast %107 : vector<1x1x32xf32> to vector<1x32xf32>
    %109 = vector.shape_cast %67 : vector<1x32xf32> to vector<1x1x32xf32>
    tpu.vector_store %arg7[%c1_56, %c0_57, %c0_58], %109 {strides = array<i32>} : memref<3x1x32xf32, #tpu.memory_space<vmem>>, vector<1x1x32xf32>,
    %c2_59 = arith.constant 2 : index
    %c0_60 = arith.constant 0 : index
    %c0_61 = arith.constant 0 : index
    %110 = vector.load %arg6[%c2_59, %c0_60, %c0_61] : memref<3x1x32xf32, #tpu.memory_space<vmem>>, vector<1x1x32xf32>
    %111 = vector.shape_cast %110 : vector<1x1x32xf32> to vector<1x32xf32>
    %112 = vector.shape_cast %97 : vector<1x32xf32> to vector<1x1x32xf32>
    tpu.vector_store %arg6[%c2_59, %c0_60, %c0_61], %112 {strides = array<i32>} : memref<3x1x32xf32, #tpu.memory_space<vmem>>, vector<1x1x32xf32>,
    %c2_62 = arith.constant 2 : index
    %c0_63 = arith.constant 0 : index
    %c0_64 = arith.constant 0 : index
    %113 = vector.load %arg7[%c2_62, %c0_63, %c0_64] : memref<3x1x32xf32, #tpu.memory_space<vmem>>, vector<1x1x32xf32>
    %114 = vector.shape_cast %113 : vector<1x1x32xf32> to vector<1x32xf32>
    %115 = vector.shape_cast %95 : vector<1x32xf32> to vector<1x1x32xf32>
    tpu.vector_store %arg7[%c2_62, %c0_63, %c0_64], %115 {strides = array<i32>} : memref<3x1x32xf32, #tpu.memory_space<vmem>>, vector<1x1x32xf32>,
    return
  }
}

</mosaic_0001>

<bundles_post_ra>
// kernel: stacked_lstm_cell_fused.1
= control target key start
LH: loop header
LB: loop body
LE: loop exit
PB: predicated region body
PF: predicated region fallthrough
CT: control target
= control target key end

     0   :  { %13 = vsyncpa [#allocation3], 0  ;;  %s1192_s0 = inlined_call_operand.vmem [shape: f32[1,32], index: 0, kind: input, shape index: {}]   ;;  %s1193_s1 = inlined_call_operand.hbm [shape: f32[3,1,32], index: 1, kind: input, shape index: {}, may-alias: {1,6}]   ;;  %s1194_s2 = inlined_call_operand.hbm [shape: f32[3,1,32], index: 2, kind: input, shape index: {}, may-alias: {2,7}]   ;;  %s1195_s3 = inlined_call_operand.hbm [shape: bf16[128,384], index: 3, kind: input, shape index: {}]   ;;  %s1196_s4 = inlined_call_operand.hbm [shape: bf16[3,32,128], index: 4, kind: input, shape index: {}]   ;;  %s1197_s5 = inlined_call_operand.vmem [shape: f32[1,384], index: 5, kind: input, shape index: {}]   ;;  %s1198_s6 = inlined_call_operand.hbm [shape: f32[3,1,32], index: 6, kind: output, shape index: {0}, may-alias: {1,6}]   ;;  %s1199_s7 = inlined_call_operand.hbm [shape: f32[3,1,32], index: 7, kind: output, shape index: {1}, may-alias: {2,7}]  }
   0x1   :  { %14 = vsyncpa [#allocation6], 0 }
   0x2   :  { %15 = vsyncpa [#allocation9], 0 }
   0x3   :  { %16 = vsyncpa [#allocation4], 0 }
   0x4   :  { %17 = vsyncpa [#allocation12], 0  ;;  %s964_s24 = smov [#allocation5]   ;;  %s965_s26 = smov [#allocation2]  }
   0x5   :  { %s37_s25 = sshll.u32 %s964_s24, 4  ;;  %s25_s27 = sshll.u32 %s965_s26, 4  ;;  %s38_s25 = int_to_ptr.vmem [resolvable:$true] %s37_s25  ;;  %s1021_s27 = int_to_ptr.vmem [resolvable:$true] %s25_s27 }
   0x6   :  { %s822_s30 = scalar_lea.hbm %s1194_s2, 48 }
   0x7   :  { %p823_p0 = scmp.ne.s32.totalorder %s1194_s2, %s822_s30  ;;  %p826_p1 = scmp.lt.u32.totalorder %s822_s30, %s1194_s2 }
   0x9   :  { %p828_p2 = pnand %p826_p1, %p823_p0 }
   0xb   :  { %831 = shalt.err (!%p828_p2)
}
   0xc   :  { %s832_s12 = scalar_lea.vmem %s38_s25, 48  ;;  %s836_s13 = scalar_lea.vmem %s38_s25, 64 }
   0xd   :  { %p833_p3 = scmp.ne.s32.totalorder %s38_s25, %s832_s12  ;;  %p837_p4 = scmp.lt.s32.totalorder %s38_s25, %s38_s25 }
   0xe   :  { %p838_p5 = scmp.lt.s32.totalorder %s836_s13, %s832_s12 }
  0x10   :  { %p839_p6 = por %p838_p5, %p837_p4 }
  0x12   :  { %p840_p7 = pnand %p839_p6, %p833_p3 }
  0x14   :  { %843 = shalt.err (!%p840_p7)
}
  0x15   :  { %s966_s14 = smov 16   ;;  %s967_s15 = smov 1  }
  0x16   :  { %43 = dma.hbm_to_vmem [thread:$0]  %s1194_s2, 48, %s38_s25, [#allocation6], %s966_s14, %s966_s14, %s967_s15  }
  0x17   :  { %s844_s20 = scalar_lea.hbm %s1193_s1, 48 }
  0x18   :  { %p845_p8 = scmp.ne.s32.totalorder %s1193_s1, %s844_s20  ;;  %p848_p9 = scmp.lt.u32.totalorder %s844_s20, %s1193_s1 }
  0x1a   :  { %p850_p10 = pnand %p848_p9, %p845_p8 }
  0x1c   :  { %853 = shalt.err (!%p850_p10)
}
  0x1d   :  { %s854_s26 = scalar_lea.vmem %s1021_s27, 48  ;;  %s858_s2 = scalar_lea.vmem %s1021_s27, 64 }
  0x1e   :  { %p855_p11 = scmp.ne.s32.totalorder %s1021_s27, %s854_s26  ;;  %p859_p12 = scmp.lt.s32.totalorder %s1021_s27, %s1021_s27 }
  0x1f   :  { %p860_p13 = scmp.lt.s32.totalorder %s858_s2, %s854_s26 }
  0x21   :  { %p861_p0 = por %p860_p13, %p859_p12 }
  0x23   :  { %p862_p1 = pnand %p861_p0, %p855_p11 }
  0x25   :  { %865 = shalt.err (!%p862_p1)
}
  0x26   :  { %31 = dma.hbm_to_vmem [thread:$0]  %s1193_s1, 48, %s1021_s27, [#allocation3], %s966_s14, %s966_s14, %s967_s15  }
  0x27   :  { %s968_s29 = smov [#allocation7]   ;;  %s866_s10 = scalar_lea.hbm %s1195_s3, 3072 }
  0x28   :  { %s49_s30 = sshll.u32 %s968_s29, 4  ;;  %p867_p2 = scmp.ne.s32.totalorder %s1195_s3, %s866_s10  ;;  %s50_s30 = int_to_ptr.vmem [resolvable:$true] %s49_s30 }
  0x29   :  { %p870_p3 = scmp.lt.u32.totalorder %s866_s10, %s1195_s3 }
  0x2b   :  { %p872_p4 = pnand %p870_p3, %p867_p2 }
  0x2d   :  { %875 = shalt.err (!%p872_p4)
}
  0x2e   :  { %s876_s17 = scalar_lea.vmem %s50_s30, 3072  ;;  %p881_p6 = scmp.lt.s32.totalorder %s50_s30, %s50_s30 }
  0x2f   :  { %p877_p5 = scmp.ne.s32.totalorder %s50_s30, %s876_s17  ;;  %p882_p7 = scmp.lt.s32.totalorder %s876_s17, %s876_s17 }
  0x31   :  { %p883_p8 = por %p882_p7, %p881_p6 }
  0x33   :  { %p884_p9 = pnand %p883_p8, %p877_p5 }
  0x35   :  { %887 = shalt.err (!%p884_p9)
}
  0x36   :  { %s969_s1 = smov 192   ;;  %s970_s27 = smov 12  }
  0x37   :  { %55 = dma.hbm_to_vmem [thread:$0]  %s1195_s3, 3072, %s50_s30, [#allocation6], %s969_s1, %s969_s1, %s970_s27  }
  0x38   :  { %s971_s20 = smov [#allocation8]   ;;  %s888_s24 = scalar_lea.hbm %s1196_s4, 768 }
  0x39   :  { %s61_s21 = sshll.u32 %s971_s20, 4  ;;  %p889_p10 = scmp.ne.s32.totalorder %s1196_s4, %s888_s24  ;;  %s62_s21 = int_to_ptr.vmem [resolvable:$true] %s61_s21 }
  0x3a   :  { %p892_p11 = scmp.lt.u32.totalorder %s888_s24, %s1196_s4 }
  0x3c   :  { %p894_p12 = pnand %p892_p11, %p889_p10 }
  0x3e   :  { %897 = shalt.err (!%p894_p12)
}
  0x3f   :  { %s898_s29 = scalar_lea.vmem %s62_s21, 768  ;;  %p903_p0 = scmp.lt.s32.totalorder %s62_s21, %s62_s21 }
  0x40   :  { %p899_p13 = scmp.ne.s32.totalorder %s62_s21, %s898_s29  ;;  %p904_p1 = scmp.lt.s32.totalorder %s898_s29, %s898_s29 }
  0x42   :  { %p905_p2 = por %p904_p1, %p903_p0 }
  0x44   :  { %p906_p3 = pnand %p905_p2, %p899_p13 }
  0x46   :  { %909 = shalt.err (!%p906_p3)
}
  0x47   :  { %s972_s3 = smov 64   ;;  %s973_s30 = smov 4  }
  0x48   :  { %67 = dma.hbm_to_vmem [thread:$0]  %s1196_s4, 768, %s62_s21, [#allocation9], %s972_s3, %s972_s3, %s973_s30  }
  0x49   :  { %954 = dma.done.wait [#allocation3], 48  }
  0x4a   :  { %955 = vsyncadd [#allocation3], 4294967248 }
  0x4b   :  { %956 = dma.done.wait [#allocation6], 3120  }
  0x4c   :  { %957 = vsyncadd [#allocation6], 4294964176 }
  0x4d   :  { %958 = dma.done.wait [#allocation9], 768  }
  0x4e   :  { %959 = vsyncadd [#allocation9], 4294966528  ;;  %v974_v0 = vmov 0.0   ;;  %v975_v1 = vmov 0   ;;  %vm976_vm0 = vmmov 0   ;;  %s977_s10 = smov 32   ;;  %v287_v38 = vlaneseq }
  0x4f   :  { %716 = vmatprep.subr.bf16.mxu1 %v974_v0  ;;  %334 = vmatprep.mubr.bf16.mxu0 %v975_v1  ;;  %v665_v2 = vld [vmem:[#allocation2] ss:$0 sm:$0xff]  ;;  %v666_v3 = vld [vmem:[#allocation2 + $0x1] ss:$0 sm:$0xff]  ;;  %v667_v4 = vld [vmem:[#allocation2 + $0x2] ss:$0 sm:$0xff] }
  0x50   :  { %732 = vmatprep.mubr.msk.bf16.mxu1 %vm976_vm0, %v974_v0  ;;  %132 = vrot.lane.b32.xlu0 %v665_v2, %s977_s10  ;;  %s978_s4 = smov 96   ;;  %v774_v5 = vld [vmem:[#allocation7 + $0x4] ss:$12 sps:$4 sm:$0xff]   ;;  %v776_v6 = vld [vmem:[#allocation7] ss:$12 sps:$4 sm:$0xff]   ;;  %vm151_vm1 = vcmask 261120  }
  0x51   :  { %148 = vrot.lane.b32.xlu1 %v667_v4, %s978_s4  ;;  %302 = vmatprep.subr.bf16.mxu0 %v774_v5  ;;  %v777_v7 = vld [vmem:[#allocation7 + $0x8] ss:$12 sps:$4 sm:$0xff]   ;;  %v780_v9 = vld [vmem:[#allocation7 + $0x18] ss:$12 sps:$4 sm:$0xff]   ;;  %v781_v10 = vld [vmem:[#allocation7 + $0x20] ss:$12 sps:$4 sm:$0xff]  }
  0x52   :  { %303 = vmatpush1.bf16.msra.mxu0 %v776_v6  ;;  %v778_v8 = vld [vmem:[#allocation7 + $0x1c] ss:$12 sps:$4 sm:$0xff]   ;;  %717 = vmatpush3.bf16.msra.mxu1 %v777_v7  ;;  %v782_v11 = vld [vmem:[#allocation7 + $0x34] ss:$12 sps:$4 sm:$0xff]   ;;  %v785_v13 = vld [vmem:[#allocation7 + $0x38] ss:$12 sps:$4 sm:$0xff]  }
  0x53   :  { %304 = vmatprep.subr.bf16.mxu0 %v778_v8  ;;  %718 = vmatprep.subr.bf16.mxu1 %v974_v0  ;;  %v784_v12 = vld [vmem:[#allocation7 + $0x30] ss:$12 sps:$4 sm:$0xff]   ;;  %v786_v14 = vld [vmem:[#allocation7 + $0x4c] ss:$12 sps:$4 sm:$0xff]   ;;  %v788_v15 = vld [vmem:[#allocation7 + $0x48] ss:$12 sps:$4 sm:$0xff]  }
  0x54   :  { %140 = vrot.lane.b32.xlu0 %v666_v3, %s972_s3  ;;  %v789_v16 = vld [vmem:[#allocation7 + $0x50] ss:$12 sps:$4 sm:$0xff]   ;;  %v792_v18 = vld [vmem:[#allocation7 + $0x60] ss:$12 sps:$4 sm:$0xff]   ;;  %v793_v19 = vld [vmem:[#allocation7 + $0x68] ss:$12 sps:$4 sm:$0xff]  }
  0x55   :  { %v790_v17 = vld [vmem:[#allocation7 + $0x64] ss:$12 sps:$4 sm:$0xff]   ;;  %v794_v20 = vld [vmem:[#allocation7 + $0x7c] ss:$12 sps:$4 sm:$0xff]   ;;  %v797_v22 = vld [vmem:[#allocation7 + $0x80] ss:$12 sps:$4 sm:$0xff]  }
  0x56   :  { %305 = vmatpush1.bf16.msra.mxu0 %v780_v9  ;;  %719 = vmatpush3.bf16.msra.mxu1 %v781_v10  ;;  %v796_v21 = vld [vmem:[#allocation7 + $0x78] ss:$12 sps:$4 sm:$0xff]   ;;  %v798_v23 = vld [vmem:[#allocation7 + $0x94] ss:$12 sps:$4 sm:$0xff]   ;;  %v692_v24 = vld [vmem:[#allocation5] ss:$0 sm:$0xff] }
  0x57   :  { %306 = vmatprep.subr.bf16.mxu0 %v782_v11  ;;  %720 = vmatprep.subr.bf16.mxu1 %v974_v0  ;;  %v800_v25 = vld [vmem:[#allocation7 + $0x90] ss:$12 sps:$4 sm:$0xff]   ;;  %v801_v26 = vld [vmem:[#allocation7 + $0x98] ss:$12 sps:$4 sm:$0xff]   ;;  %v804_v28 = vld [vmem:[#allocation7 + $0xa8] ss:$12 sps:$4 sm:$0xff]  }
  0x58   :  { %391 = vrot.lane.b32.xlu0 %v692_v24, %s977_s10  ;;  %v802_v27 = vld [vmem:[#allocation7 + $0xac] ss:$12 sps:$4 sm:$0xff]   ;;  %v805_v29 = vld [vmem:[#allocation7 + $0xb0] ss:$12 sps:$4 sm:$0xff]   ;;  %vm153_vm2 = vcmask 523264   ;;  %vm155_vm3 = vcmask 785408  }
  0x59   :  { %v93_v31 = vld [vmem:[%s1192_s0] sm:$0x1]  ;;  %v1109_v39 = vshrl.u32 %v287_v38, 7  ;;  %v806_v49 = vld [vmem:[#allocation8 + $0x10] sm:$0xff]   ;;  %v696_v60 = vld [vmem:[#allocation5 + $0x1] ss:$0 sm:$0xff] }
  0x5a   :  { %307 = vmatpush1.bf16.msra.mxu0 %v784_v12  ;;  %721 = vmatpush3.bf16.msra.mxu1 %v785_v13  ;;  %v1115_v41 = vld [vmem:[%s1197_s5] sm:$0x7]  ;;  %v808_v12 = vld [vmem:[#allocation8 + $0x20] sm:$0xff]   ;;  %v809_v13 = vld [vmem:[#allocation8 + $0x28] sm:$0xff]   ;;  %vm599_vm4 = vcmask 253952   ;;  %s979_s5 = smov [#allocation11]  }
  0x5b   :  { %308 = vmatprep.subr.bf16.mxu0 %v786_v14  ;;  %722 = vmatprep.subr.bf16.mxu1 %v974_v0  ;;  %v289_v40 = vsub.s32 0, %v1109_v39  ;;  %v807_v51 = vld [vmem:[#allocation8 + $0x18] sm:$0xff]   ;;  %v293_v62 = vsub.s32 1, %v1109_v39  ;;  %s647_s16 = sshll.u32 %s979_s5, 4  ;;  %s648_s16 = int_to_ptr.vmem [resolvable:$true] %s647_s16 }
  0x5c   :  { %s910_s17 = scalar_lea.vmem %s648_s16, 48  ;;  %s914_s1 = scalar_lea.vmem %s648_s16, 64 }
  0x5d   :  { %v290_v42 = vrot.slane %v1115_v41, %v289_v40  ;;  %v294_v63 = vrot.slane %v1115_v41, %v293_v62  ;;  %p911_p4 = scmp.ne.s32.totalorder %s648_s16, %s910_s17  ;;  %p915_p5 = scmp.lt.s32.totalorder %s648_s16, %s648_s16 }
  0x5e   :  { %309 = vmatpush1.bf16.msra.mxu0 %v788_v15  ;;  %723 = vmatpush3.bf16.msra.mxu1 %v789_v16  ;;  %p916_p6 = scmp.lt.s32.totalorder %s914_s1, %s910_s17 }
  0x5f   :  { %310 = vmatprep.subr.bf16.mxu0 %v790_v17  ;;  %724 = vmatprep.subr.bf16.mxu1 %v974_v0 }
  0x60   :  { %p917_p7 = por %p916_p6, %p915_p5 }
  0x62   :  { %311 = vmatpush1.bf16.msra.mxu0 %v792_v18  ;;  %725 = vmatpush3.bf16.msra.mxu1 %v793_v19  ;;  %v700_v19 = vld [vmem:[#allocation5 + $0x2] ss:$0 sm:$0xff]  ;;  %p918_p8 = pnand %p917_p7, %p911_p4 }
  0x63   :  { %312 = vmatprep.subr.bf16.mxu0 %v794_v20  ;;  %726 = vmatprep.subr.bf16.mxu1 %v974_v0 }
  0x66   :  { %313 = vmatpush1.bf16.msra.mxu0 %v796_v21  ;;  %727 = vmatpush3.bf16.msra.mxu1 %v797_v22 }
  0x67   :  { %314 = vmatprep.subr.bf16.mxu0 %v798_v23  ;;  %728 = vmatprep.subr.bf16.mxu1 %v974_v0 }
  0x6a   :  { %315 = vmatpush1.bf16.msra.mxu0 %v800_v25  ;;  %729 = vmatpush3.bf16.msra.mxu1 %v801_v26 }
  0x6b   :  { %316 = vmatprep.subr.bf16.mxu0 %v802_v27  ;;  %730 = vmatprep.subr.bf16.mxu1 %v974_v0 }
  0x6e   :  { %317 = vmatpush1.bf16.msra.mxu0 %v804_v28  ;;  %731 = vmatpush3.bf16.msra.mxu1 %v805_v29 }
  0x6f   :  { %736 = vmatprep.subr.bf16.mxu0 %v974_v0  ;;  %744 = vmatprep.subr.bf16.mxu1 %v974_v0 }
  0xc2   :  { %v133_v30 = vpop.permute.xlu0 %132 }
  0xc3   :  { %v149_v32 = vpop.permute.xlu1 %148  ;;  %v152_v33 = vsel %vm151_vm1, %v93_v31, %v133_v30 }
  0xc6   :  { %v141_v34 = vpop.permute.xlu0 %140 }
  0xc7   :  { %v154_v35 = vsel %vm153_vm2, %v152_v33, %v141_v34 }
  0xc8   :  { %v156_v36 = vsel %vm155_vm3, %v154_v35, %v149_v32 }
  0xc9   :  { %v157_v37 = vpack.c.bf16 %v156_v36, %v156_v36 }
  0xca   :  { %v392_v55 = vpop.permute.xlu0 %391 }
  0xcb   :  { %335 = vmatmul.mubr.bf16.vlgmr.msra.gmra.mrb[0].mxu0 %v157_v37  ;;  %733 = vmatmul.mubr.bf16.vlgmr.msra.gmra.mrb[0].mxu1 %v157_v37 }
  0xcc   :  { %740 = vmatprep.mubr.msk.bf16.mxu0 %vm976_vm0, %v974_v0  ;;  %748 = vmatprep.mubr.msk.bf16.mxu1 %vm976_vm0, %v974_v0 }
  0xcd   :  { %737 = vmatpush3.bf16.msra.mxu0 %v806_v49  ;;  %745 = vmatpush3.bf16.msra.mxu1 %v808_v12 }
  0xce   :  { %738 = vmatprep.subr.bf16.mxu0 %v974_v0  ;;  %746 = vmatprep.subr.bf16.mxu1 %v974_v0  ;;  %v297_v0 = vsub.s32 2, %v1109_v39 }
  0xd0   :  { %v298_v22 = vrot.slane %v1115_v41, %v297_v0 }
  0xd1   :  { %739 = vmatpush3.bf16.msra.mxu0 %v807_v51  ;;  %747 = vmatpush3.bf16.msra.mxu1 %v809_v13 }
 0x19e   :  { %v336_v43 = vpop.f32.mrb[0].mxu0 }
 0x19f   :  { %v337_v44 = vadd.f32 %v336_v43, %v290_v42  ;;  %v338_v45 = vpop.f32.mrb[1].mxu0 }
 0x1a0   :  { %v340_v46 = vpop.f32.mrb[2].mxu0  ;;  %v339_v1 = vadd.f32 %v338_v45, %v294_v63 }
 0x1a1   :  { %810 = vtanh.f32 %v337_v44  ;;  %v341_v47 = vpop.f32.mrb[3].mxu0 }
 0x1ab   :  { %v811_v48 = vpop.eup %810 }
 0x1ac   :  { %396 = vrot.lane.b32.xlu1 %v811_v48, %s972_s3  ;;  %v384_v50 = vadd.f32 1.0, %v811_v48 }
 0x1ae   :  { %v1120_v52 = vmul.f32 0.5, %v384_v50 }
 0x1b0   :  { %v394_v56 = vmul.f32 %v392_v55, %v1120_v52 }
 0x21e   :  { %v397_v53 = vpop.permute.xlu1 %396 }
 0x21f   :  { %v399_v54 = vmul.f32 %v397_v53, %v1120_v52 }
 0x221   :  { %401 = vrot.lane.b32.xlu1 %v399_v54, %s977_s10 }
 0x293   :  { %v402_v57 = vpop.permute.xlu1 %401 }
 0x294   :  { %v1125_v58 = vadd.f32 %v402_v57, %v394_v56 }
 0x296   :  { %v411_v59 = vpack.c.bf16 %v1125_v58, %v1125_v58 }
 0x298   :  { %418 = vrot.lane.b32.xlu0 %v411_v59, %s978_s4 }
 0x29c   :  { %483 = vrot.lane.b32.xlu0 %v696_v60, %s977_s10 }
 0x30a   :  { %v419_v61 = vpop.permute.xlu0 %418 }
 0x30b   :  { %741 = vmatmul.mubr.msk.bf16.vlgmr.msra.gmra.mrb[4].mxu0 %vm151_vm1, %v419_v61 }
 0x30e   :  { %v484_v14 = vpop.permute.xlu0 %483 }
 0x3de   :  { %v469_v2 = vpop.f32.mrb[4].mxu0 }
 0x3df   :  { %v470_v3 = vadd.f32 %v469_v2, %v339_v1  ;;  %v742_v4 = vpop.f32.mrb[5].mxu0 }
 0x3e0   :  { %v472_v5 = vpop.f32.mrb[6].mxu0 }
 0x3e1   :  { %812 = vtanh.f32 %v470_v3  ;;  %v743_v6 = vpop.f32.mrb[7].mxu0 }
 0x3e2   :  { %814 = vtanh.f32 %v1125_v58 }
 0x3eb   :  { %v813_v7 = vpop.eup %812 }
 0x3ec   :  { %488 = vrot.lane.b32.xlu1 %v813_v7, %s972_s3  ;;  %v476_v8 = vadd.f32 1.0, %v813_v7  ;;  %v815_v20 = vpop.eup %814 }
 0x3ee   :  { %v477_v9 = vmul.f32 0.5, %v476_v8 }
 0x3f0   :  { %v486_v15 = vmul.f32 %v484_v14, %v477_v9 }
 0x45e   :  { %v489_v10 = vpop.permute.xlu1 %488 }
 0x45f   :  { %v491_v11 = vmul.f32 %v489_v10, %v477_v9 }
 0x461   :  { %493 = vrot.lane.b32.xlu1 %v491_v11, %s977_s10 }
 0x4d3   :  { %v494_v16 = vpop.permute.xlu1 %493 }
 0x4d4   :  { %v496_v17 = vadd.f32 %v494_v16, %v486_v15 }
 0x4d6   :  { %v503_v18 = vpack.c.bf16 %v496_v17, %v496_v17 }
 0x4d8   :  { %510 = vrot.lane.b32.xlu0 %v503_v18, %s978_s4 }
 0x4dc   :  { %575 = vrot.lane.b32.xlu0 %v700_v19, %s977_s10 }
 0x4e0   :  { %407 = vrot.lane.b32.xlu0 %v815_v20, %s972_s3 }
 0x54a   :  { %v511_v21 = vpop.permute.xlu0 %510 }
 0x54b   :  { %749 = vmatmul.mubr.msk.bf16.vlgmr.msra.gmra.mrb[0].mxu1 %vm151_vm1, %v511_v21 }
 0x54e   :  { %v576_v31 = vpop.permute.xlu0 %575 }
 0x552   :  { %v408_v35 = vpop.permute.xlu0 %407 }
 0x553   :  { %v410_v36 = vmul.f32 %v408_v35, %v1120_v52 }
 0x61e   :  { %v561_v23 = vpop.f32.mrb[0].mxu1 }
 0x61f   :  { %v752_v24 = vadd.f32 %v561_v23, %v298_v22  ;;  %v750_v25 = vpop.f32.mrb[1].mxu1 }
 0x620   :  { %v564_v26 = vpop.f32.mrb[2].mxu1 }
 0x621   :  { %816 = vtanh.f32 %v752_v24  ;;  %v751_v27 = vpop.f32.mrb[3].mxu1 }
 0x622   :  { %818 = vtanh.f32 %v496_v17 }
 0x62b   :  { %v817_v28 = vpop.eup %816 }
 0x62c   :  { %580 = vrot.lane.b32.xlu1 %v817_v28, %s972_s3  ;;  %v568_v29 = vadd.f32 1.0, %v817_v28  ;;  %v819_v34 = vpop.eup %818 }
 0x62e   :  { %v569_v30 = vmul.f32 0.5, %v568_v29 }
 0x630   :  { %v578_v37 = vmul.f32 %v576_v31, %v569_v30 }
 0x69e   :  { %v581_v32 = vpop.permute.xlu1 %580 }
 0x69f   :  { %v583_v33 = vmul.f32 %v581_v32, %v569_v30 }
 0x6a1   :  { %585 = vrot.lane.b32.xlu1 %v583_v33, %s977_s10 }
 0x6a5   :  { %499 = vrot.lane.b32.xlu1 %v819_v34, %s972_s3 }
 0x6a9   :  { %596 = vrot.lane.b32.xlu1 %v410_v36, %s977_s10 }
 0x713   :  { %v586_v38 = vpop.permute.xlu1 %585 }
 0x714   :  { %v588_v39 = vadd.f32 %v586_v38, %v578_v37 }
 0x716   :  { %820 = vtanh.f32 %v588_v39 }
 0x717   :  { %v500_v40 = vpop.permute.xlu1 %499 }
 0x718   :  { %v502_v41 = vmul.f32 %v500_v40, %v477_v9 }
 0x71a   :  { %607 = vrot.lane.b32.xlu1 %v502_v41, %s977_s10 }
 0x71b   :  { %v597_v42 = vpop.permute.xlu1 %596 }
 0x71c   :  { %600 = vst.msk [vmem:[#allocation10] sm:$0x1] %vm599_vm4, %v597_v42 }
 0x720   :  { %v821_v43 = vpop.eup %820 }
 0x721   :  { %591 = vrot.lane.b32.xlu0 %v821_v43, %s972_s3 }
 0x725   :  { %602 = vrot.lane.b32.xlu0 %v1125_v58, %s978_s4 }
 0x729   :  { %613 = vrot.lane.b32.xlu0 %v496_v17, %s978_s4 }
 0x72d   :  { %625 = vrot.lane.b32.xlu0 %v588_v39, %s978_s4 }
 0x78c   :  { %v608_v44 = vpop.permute.xlu1 %607 }
 0x78d   :  { %611 = vst.msk [vmem:[#allocation10 + $0x1] sm:$0x1] %vm599_vm4, %v608_v44 }
 0x793   :  { %v592_v45 = vpop.permute.xlu0 %591 }
 0x794   :  { %v594_v46 = vmul.f32 %v592_v45, %v569_v30 }
 0x796   :  { %619 = vrot.lane.b32.xlu1 %v594_v46, %s977_s10 }
 0x797   :  { %v603_v47 = vpop.permute.xlu0 %602 }
 0x798   :  { %605 = vst.msk [vmem:[#allocation11] sm:$0x1] %vm599_vm4, %v603_v47 }
 0x79b   :  { %v614_v48 = vpop.permute.xlu0 %613 }
 0x79c   :  { %617 = vst.msk [vmem:[#allocation11 + $0x1] sm:$0x1] %vm599_vm4, %v614_v48 }
 0x79f   :  { %v626_v49 = vpop.permute.xlu0 %625 }
 0x7a0   :  { %629 = vst.msk [vmem:[#allocation11 + $0x2] sm:$0x1] %vm599_vm4, %v626_v49 }
 0x7a1   :  { %921 = shalt.err (!%p918_p8)
}
 0x7a2   :  { %s922_s19 = scalar_lea.hbm %s1199_s7, 48 }
 0x7a3   :  { %p923_p9 = scmp.ne.s32.totalorder %s1199_s7, %s922_s19  ;;  %p926_p10 = scmp.lt.u32.totalorder %s922_s19, %s1199_s7 }
 0x7a5   :  { %p928_p11 = pnand %p926_p10, %p923_p9 }
 0x7a7   :  { %931 = shalt.err (!%p928_p11)
}
 0x7a8   :  { %653 = dma.vmem_to_hbm [thread:$0]  %s648_s16, 48, %s1199_s7, [#allocation12], %s966_s14, %s966_s14, %s967_s15  }
 0x7a9   :  { %s980_s2 = smov [#allocation10]  }
 0x7aa   :  { %s635_s25 = sshll.u32 %s980_s2, 4  ;;  %s636_s25 = int_to_ptr.vmem [resolvable:$true] %s635_s25 }
 0x7ab   :  { %s932_s28 = scalar_lea.vmem %s636_s25, 48  ;;  %s936_s29 = scalar_lea.vmem %s636_s25, 64 }
 0x7ac   :  { %p933_p12 = scmp.ne.s32.totalorder %s636_s25, %s932_s28  ;;  %p937_p13 = scmp.lt.s32.totalorder %s636_s25, %s636_s25 }
 0x7ad   :  { %p938_p0 = scmp.lt.s32.totalorder %s936_s29, %s932_s28 }
 0x7af   :  { %p939_p1 = por %p938_p0, %p937_p13 }
 0x7b1   :  { %p940_p2 = pnand %p939_p1, %p933_p12 }
 0x808   :  { %v620_v50 = vpop.permute.xlu1 %619 }
 0x809   :  { %623 = vst.msk [vmem:[#allocation10 + $0x2] sm:$0x1] %vm599_vm4, %v620_v50 }
 0x80a   :  { %943 = shalt.err (!%p940_p2)
}
 0x80b   :  { %s944_s8 = scalar_lea.hbm %s1198_s6, 48 }
 0x80c   :  { %p945_p3 = scmp.ne.s32.totalorder %s1198_s6, %s944_s8  ;;  %p948_p4 = scmp.lt.u32.totalorder %s944_s8, %s1198_s6 }
 0x80e   :  { %p950_p5 = pnand %p948_p4, %p945_p3 }
 0x810   :  { %953 = shalt.err (!%p950_p5)
}
 0x811   :  { %641 = dma.vmem_to_hbm [thread:$0]  %s636_s25, 48, %s1198_s6, [#allocation4], %s966_s14, %s966_s14, %s967_s15  }
 0x812   :  { %960 = dma.done.wait [#allocation4], 48  }
 0x813   :  { %961 = vsyncadd [#allocation4], 4294967248 }
 0x814   :  { %962 = dma.done.wait [#allocation12], 48  }
 0x815   :  { %963 = vsyncadd [#allocation12], 4294967248 }
 0x816   :  { %660 = vsyncpa [#allocation3], 1 }
 0x817   :  { %661 = vsyncpa [#allocation6], 1 }
 0x818   :  { %662 = vsyncpa [#allocation9], 1 }
 0x819   :  { %663 = vsyncpa [#allocation4], 1 }
 0x81a   :  { %664 = vsyncpa [#allocation12], 1 }

</bundles_post_ra>
